<compile_context>
chip_gen: v6e
topology: v6e:2x2x1
jax: 0.10.0
libtpu: 0.0.40
codegen_flags: <defaults>
</compile_context>

<pallas_src>
import math
from functools import partial

import jax
import jax.numpy as jnp
from jax import lax
from jax.experimental import pallas as pl
from jax.experimental.pallas import tpu as pltpu


def _encoder_kernel(src_ref,      # SMEM (B*S,) int32  -- scalar prefetch (flattened token ids)
                    embed_ref,    # VMEM (vocab, D) f32 -- resident embedding table
                    wqkv_ref,     # VMEM (D, 3D) compute dtype (1/sqrt(d_k) folded into Wq)
                    bqkv_ref,     # VMEM (1, 3D) f32          (scale folded into bq)
                    wo_ref,       # VMEM (D, D) compute dtype
                    bo_ref,       # VMEM (1, D) f32
                    o_ref,        # VMEM (Bt, S, D) output block
                    x_buf,        # VMEM (Bt, S, D) f32 scratch (gathered embeddings)
                    *, heads, d_k, d_model, seq, batch_tile, compute_dtype):
    D = d_model
    base = pl.program_id(0) * (batch_tile * seq)

    # ---- embedding gather from the VMEM-resident table --------------------
    # One dynamic (1, D) row copy per token, inside fori_loop: no DMA
    # descriptors, no per-token unroll, no semaphore waits.
    # (Table / x_buf kept f32 so dynamic sublane slicing stays at 32-bit
    #  granularity; bf16 packing of the gather path is a possible follow-up.)
    for lb in range(batch_tile):                      # static; batch_tile defaults to 1
        row0 = base + lb * seq

        def gather_row(s, carry, lb=lb, row0=row0):
            tok = src_ref[row0 + s]                   # SMEM scalar read
            x_buf[lb, pl.ds(s, 1), :] = embed_ref[pl.ds(tok, 1), :]
            return carry

        lax.fori_loop(0, seq, gather_row, 0)

    x = x_buf[...].astype(compute_dtype)              # (Bt, S, D)

    # ---- fused QKV projection: one (D, 3D) MXU pass, f32 accumulation ----
    qkv = lax.dot_general(x, wqkv_ref[...],
                          dimension_numbers=(((2,), (0,)), ((), ())),
                          preferred_element_type=jnp.float32)        # (Bt, S, 3D)
    qkv = qkv + bqkv_ref[...]                                        # f32 bias (1, 3D)

    # ---- linear attention (mask=None => no softmax): Q_h @ (K_h^T V_h) ----
    # Head concat folded into Wo: accumulate attn_h @ Wo[h-rows] into `out`.
    out = jnp.zeros((batch_tile, seq, D), jnp.float32)
    for h in range(heads):                            # static unroll over heads
        lo = h * d_k
        qh = qkv[:, :, lo:lo + d_k]                                  # f32, pre-scaled
        kh = qkv[:, :, D + lo:D + lo + d_k].astype(compute_dtype)
        vh = qkv[:, :, 2 * D + lo:2 * D + lo + d_k].astype(compute_dtype)
        # K^T V: contract over the sequence axis, batched over Bt (no transpose).
        kv = lax.dot_general(kh, vh,
                             dimension_numbers=(((1,), (1,)), ((0,), (0,))),
                             preferred_element_type=jnp.float32)     # (Bt, d_k, d_k) f32
        # Keep kv (and q) in f32: the sum over all S positions must not be
        # rounded to bf16 before the second contraction.
        attn_h = lax.dot_general(qh, kv,
                                 dimension_numbers=(((2,), (1,)), ((0,), (0,))),
                                 preferred_element_type=jnp.float32)  # (Bt, S, d_k)
        out = out + lax.dot_general(attn_h.astype(compute_dtype),
                                    wo_ref[lo:lo + d_k, :],
                                    dimension_numbers=(((2,), (0,)), ((), ())),
                                    preferred_element_type=jnp.float32)

    o_ref[...] = (out + bo_ref[...]).astype(o_ref.dtype)


def encoder_forward(src, embed_w, params, heads, *,
                    batch_tile=1, compute_dtype=jnp.bfloat16):
    """src: (B, S) int32 token ids; embed_w: (vocab, D); params: 8-tuple of MHA weights.

    Weights use (in, out) == PyTorch W.T layout; biases are (1, D)."""
    B, S = src.shape
    vocab, D = embed_w.shape
    assert D % heads == 0
    d_k = D // heads
    wq, bq, wk, bk, wv, bv, wo, bo = params
    scale = 1.0 / math.sqrt(d_k)

    # Host-side packing: fold 1/sqrt(d_k) into Wq/bq, fuse QKV, cast weights to bf16.
    wqkv = jnp.concatenate([wq * scale, wk, wv], axis=1).astype(compute_dtype)  # (D, 3D)
    bqkv = jnp.concatenate([bq * scale, bk, bv], axis=1).astype(jnp.float32)    # (1, 3D)
    wo_c = wo.astype(compute_dtype)
    bo_c = bo.astype(jnp.float32)
    embed_c = embed_w.astype(jnp.float32)         # VMEM-resident gather table
    src_flat = src.reshape(-1).astype(jnp.int32)  # 1-D => cheap SMEM padding

    if B % batch_tile != 0:
        batch_tile = 1
    nb = B // batch_tile

    kernel = partial(_encoder_kernel, heads=heads, d_k=d_k, d_model=D, seq=S,
                     batch_tile=batch_tile, compute_dtype=compute_dtype)

    # Explicit VMEM budget (drives vmem_limit_bytes; constant-index blocks are
    # still double-buffered by the pipeline, so count them twice).
    cdt = jnp.dtype(compute_dtype).itemsize
    blk_f32 = batch_tile * S * D * 4
    est_vmem = (2 * vocab * D * 4                  # resident embedding table
                + 2 * (D * 3 * D + D * D) * cdt    # resident Wqkv + Wo
                + 2 * 4 * D * 4                    # biases
                + blk_f32                          # x_buf scratch
                + 2 * blk_f32                      # output block (double-buffered)
                + 6 * blk_f32)                     # f32 intermediates (qkv, acc, temps)
    vmem_limit = int(min(max(2 * est_vmem, 32 << 20), 48 << 20))  # fits v7x's 64 MiB too

    flops = 2 * B * S * D * (3 * D) + 4 * B * S * D * d_k + 2 * B * S * D * D
    bytes_accessed = (B * S * 4                    # token ids
                      + vocab * D * 4              # embedding table
                      + 4 * D * D * cdt            # Wqkv + Wo
                      + 4 * D * 4                  # biases
                      + B * S * D * 4)             # output

    return pl.pallas_call(
        kernel,
        out_shape=jax.ShapeDtypeStruct((B, S, D), embed_w.dtype),
        grid_spec=pltpu.PrefetchScalarGridSpec(
            num_scalar_prefetch=1,                 # flattened src -> SMEM
            grid=(nb,),
            in_specs=[
                pl.BlockSpec((vocab, D), lambda b, src: (0, 0)),     # embedding table (resident)
                pl.BlockSpec((D, 3 * D), lambda b, src: (0, 0)),     # Wqkv (resident)
                pl.BlockSpec((1, 3 * D), lambda b, src: (0, 0)),     # bqkv
                pl.BlockSpec((D, D), lambda b, src: (0, 0)),         # Wo
                pl.BlockSpec((1, D), lambda b, src: (0, 0)),         # bo
            ],
            out_specs=pl.BlockSpec((batch_tile, S, D), lambda b, src: (b, 0, 0)),
            scratch_shapes=[pltpu.VMEM((batch_tile, S, D), jnp.float32)],
        ),
        compiler_params=pltpu.CompilerParams(
            dimension_semantics=("parallel",),
            vmem_limit_bytes=vmem_limit),
        cost_estimate=pl.CostEstimate(flops=int(flops), transcendentals=0,
                                      bytes_accessed=int(bytes_accessed)),
    )(src_flat, embed_c, wqkv, bqkv, wo_c, bo_c)


def _reference(src, embed_w, params, heads):
    """Pure-JAX f32 reference mirroring the PyTorch forward (eval mode)."""
    x = jnp.take(embed_w, src, axis=0)
    wq, bq, wk, bk, wv, bv, wo, bo = params
    B, S, D = x.shape
    d_k = D // heads

    def proj(w, b):
        return (x @ w + b[0]).reshape(B, S, heads, d_k).transpose(0, 2, 1, 3)

    q, k, v = proj(wq, bq), proj(wk, bk), proj(wv, bv)
    scores = jnp.einsum('bhqd,bhkd->bhqk', q, k) / math.sqrt(d_k)   # no softmax (mask=None)
    out = jnp.einsum('bhqk,bhkd->bhqd', scores, v)
    concat = out.transpose(0, 2, 1, 3).reshape(B, S, D)
    return concat @ wo + bo[0]


if __name__ == "__main__":
    # Small shapes consistent with the module.
    vocab_size = 50
    d_model = 32
    heads = 4
    batch = 2
    seq = 8

    key = jax.random.PRNGKey(0)
    k_emb, k_src, kq, kk, kv, ko, kbq, kbk, kbv, kbo = jax.random.split(key, 10)

    embed_w = jax.random.normal(k_emb, (vocab_size, d_model), dtype=jnp.float32)
    src = jax.random.randint(k_src, (batch, seq), 0, vocab_size, dtype=jnp.int32)

    def lin(kw, kb):
        # (in, out) layout == PyTorch weight.T ; bias kept as (1, D).
        w = jax.random.normal(kw, (d_model, d_model), dtype=jnp.float32) * 0.05
        b = jax.random.normal(kb, (1, d_model), dtype=jnp.float32) * 0.05
        return w, b

    wq, bq = lin(kq, kbq)
    wk, bk = lin(kk, kbk)
    wv, bv = lin(kv, kbv)
    wo, bo = lin(ko, kbo)
    params = (wq, bq, wk, bk, wv, bv, wo, bo)

    out = encoder_forward(src, embed_w, params, heads)
    out = jax.block_until_ready(out)

    ref = _reference(src, embed_w, params, heads)
    assert out.shape == (batch, seq, d_model)
    # bf16 MXU operands with f32 accumulation => bf16-appropriate tolerance.
    max_diff = float(jnp.max(jnp.abs(out - ref)))
    assert jnp.allclose(out, ref, atol=2e-2, rtol=2e-2), \
        f"mismatch vs reference: max abs diff = {max_diff}"

    print("KERNEL_OK")
</pallas_src>

<mosaic_0001>
module attributes {stable_mosaic.version = 11 : i64} {
  func.func @_encoder_kernel(%arg0: i32, %arg1: memref<16xi32, #tpu.memory_space<smem>>, %arg2: memref<50x32xf32, #tpu.memory_space<vmem>>, %arg3: memref<32x96xbf16, #tpu.memory_space<vmem>>, %arg4: memref<1x96xf32, #tpu.memory_space<vmem>>, %arg5: memref<32x32xbf16, #tpu.memory_space<vmem>>, %arg6: memref<1x32xf32, #tpu.memory_space<vmem>>, %arg7: memref<1x8x32xf32, #tpu.memory_space<vmem>>, %arg8: memref<1x8x32xf32, #tpu.memory_space<vmem>>) attributes {dimension_semantics = [#tpu.dimension_semantics<parallel>], iteration_bounds = array<i64: 2>, scalar_prefetch = 1 : i64, scratch_operands = 1 : i64, tpu.core_type = #tpu.core_type<tc>, window_params = [{pipeline_mode = #tpu.pipeline_mode<synchronous>, transform_indices = @transform_0, window_bounds = array<i64: 50, 32>}, {pipeline_mode = #tpu.pipeline_mode<synchronous>, transform_indices = @transform_1, window_bounds = array<i64: 32, 96>}, {pipeline_mode = #tpu.pipeline_mode<synchronous>, transform_indices = @transform_2, window_bounds = array<i64: 1, 96>}, {pipeline_mode = #tpu.pipeline_mode<synchronous>, transform_indices = @transform_3, window_bounds = array<i64: 32, 32>}, {pipeline_mode = #tpu.pipeline_mode<synchronous>, transform_indices = @transform_4, window_bounds = array<i64: 1, 32>}, {transform_indices = @transform_5, window_bounds = array<i64: 1, 8, 32>}]} {
    %c8_i32 = arith.constant 8 : i32
    %0 = arith.muli %arg0, %c8_i32 : i32
    %c0_i32 = arith.constant 0 : i32
    %1 = arith.addi %0, %c0_i32 : i32
    %c0_i32_0 = arith.constant 0 : i32
    %c8_i32_1 = arith.constant 8 : i32
    %2 = arith.addi %c0_i32_0, %c8_i32_1 : i32
    %c1_i32 = arith.constant 1 : i32
    scf.for %arg9 = %c0_i32_0 to %2 step %c1_i32  : i32 {
      %61 = arith.addi %1, %arg9 : i32
      %62 = arith.index_cast %61 : i32 to index
      %63 = memref.load %arg1[%62] : memref<16xi32, #tpu.memory_space<smem>>
      %64 = arith.index_cast %63 : i32 to index
      %c0_32 = arith.constant 0 : index
      %65 = vector.load %arg2[%64, %c0_32] : memref<50x32xf32, #tpu.memory_space<vmem>>, vector<1x32xf32>
      %c0_33 = arith.constant 0 : index
      %66 = arith.index_cast %arg9 : i32 to index
      %c0_34 = arith.constant 0 : index
      %67 = vector.load %arg8[%c0_33, %66, %c0_34] : memref<1x8x32xf32, #tpu.memory_space<vmem>>, vector<1x1x32xf32>
      %68 = vector.shape_cast %67 : vector<1x1x32xf32> to vector<1x32xf32>
      %69 = vector.shape_cast %65 : vector<1x32xf32> to vector<1x1x32xf32>
      tpu.vector_store %arg8[%c0_33, %66, %c0_34], %69 {strides = array<i32>} : memref<1x8x32xf32, #tpu.memory_space<vmem>>, vector<1x1x32xf32>,
    }
    %c8_i32_2 = arith.constant 8 : i32
    %c0 = arith.constant 0 : index
    %c0_3 = arith.constant 0 : index
    %c0_4 = arith.constant 0 : index
    %3 = vector.load %arg8[%c0, %c0_3, %c0_4] : memref<1x8x32xf32, #tpu.memory_space<vmem>>, vector<1x8x32xf32>
    %4 = arith.truncf %3 : vector<1x8x32xf32> to vector<1x8x32xbf16>
    %c0_5 = arith.constant 0 : index
    %c0_6 = arith.constant 0 : index
    %5 = vector.load %arg3[%c0_5, %c0_6] : memref<32x96xbf16, #tpu.memory_space<vmem>>, vector<32x96xbf16>
    %cst = arith.constant dense<0.000000e+00> : vector<1x8x96xf32>
    %6 = tpu.matmul %4, %5, %cst {dimension_numbers = #tpu.dot_dimension_numbers<[2], [0], [0, 1], [1], [0, 0, 0, 1, 1, 1], [], []>} : vector<1x8x32xbf16>, vector<32x96xbf16>, vector<1x8x96xf32> -> vector<1x8x96xf32>
    %c0_7 = arith.constant 0 : index
    %c0_8 = arith.constant 0 : index
    %7 = vector.load %arg4[%c0_7, %c0_8] : memref<1x96xf32, #tpu.memory_space<vmem>>, vector<1x96xf32>
    %8 = vector.shape_cast %7 : vector<1x96xf32> to vector<1x1x96xf32>
    %9 = vector.broadcast %8 : vector<1x1x96xf32> to vector<1x8x96xf32>
    %10 = arith.addf %6, %9 : vector<1x8x96xf32>
    %cst_9 = arith.constant 0.000000e+00 : f32
    %11 = vector.broadcast %cst_9 : f32 to vector<1x8x32xf32>
    %12 = vector.extract_strided_slice %10 {offsets = [0, 0, 0], sizes = [1, 8, 8], strides = [1, 1, 1]} : vector<1x8x96xf32> to vector<1x8x8xf32>
    %13 = vector.extract_strided_slice %10 {offsets = [0, 0, 32], sizes = [1, 8, 8], strides = [1, 1, 1]} : vector<1x8x96xf32> to vector<1x8x8xf32>
    %14 = arith.truncf %13 : vector<1x8x8xf32> to vector<1x8x8xbf16>
    %15 = vector.extract_strided_slice %10 {offsets = [0, 0, 64], sizes = [1, 8, 8], strides = [1, 1, 1]} : vector<1x8x96xf32> to vector<1x8x8xf32>
    %16 = arith.truncf %15 : vector<1x8x8xf32> to vector<1x8x8xbf16>
    %cst_10 = arith.constant dense<0.000000e+00> : vector<1x8x8xf32>
    %17 = tpu.matmul %14, %16, %cst_10 {dimension_numbers = #tpu.dot_dimension_numbers<[1], [1], [2], [2], [0, 0, 0, 2, 1, 2], [0], [0]>} : vector<1x8x8xbf16>, vector<1x8x8xbf16>, vector<1x8x8xf32> -> vector<1x8x8xf32>
    %cst_11 = arith.constant dense<0.000000e+00> : vector<1x8x8xf32>
    %18 = tpu.matmul %12, %17, %cst_11 {dimension_numbers = #tpu.dot_dimension_numbers<[2], [1], [1], [2], [0, 0, 0, 1, 1, 2], [0], [0]>} : vector<1x8x8xf32>, vector<1x8x8xf32>, vector<1x8x8xf32> -> vector<1x8x8xf32>
    %19 = arith.truncf %18 : vector<1x8x8xf32> to vector<1x8x8xbf16>
    %c0_12 = arith.constant 0 : index
    %c0_13 = arith.constant 0 : index
    %20 = vector.load %arg5[%c0_12, %c0_13] : memref<32x32xbf16, #tpu.memory_space<vmem>>, vector<8x32xbf16>
    %cst_14 = arith.constant dense<0.000000e+00> : vector<1x8x32xf32>
    %21 = tpu.matmul %19, %20, %cst_14 {dimension_numbers = #tpu.dot_dimension_numbers<[2], [0], [0, 1], [1], [0, 0, 0, 1, 1, 1], [], []>} : vector<1x8x8xbf16>, vector<8x32xbf16>, vector<1x8x32xf32> -> vector<1x8x32xf32>
    %22 = arith.addf %11, %21 : vector<1x8x32xf32>
    %23 = vector.extract_strided_slice %10 {offsets = [0, 0, 8], sizes = [1, 8, 8], strides = [1, 1, 1]} : vector<1x8x96xf32> to vector<1x8x8xf32>
    %24 = vector.extract_strided_slice %10 {offsets = [0, 0, 40], sizes = [1, 8, 8], strides = [1, 1, 1]} : vector<1x8x96xf32> to vector<1x8x8xf32>
    %25 = arith.truncf %24 : vector<1x8x8xf32> to vector<1x8x8xbf16>
    %26 = vector.extract_strided_slice %10 {offsets = [0, 0, 72], sizes = [1, 8, 8], strides = [1, 1, 1]} : vector<1x8x96xf32> to vector<1x8x8xf32>
    %27 = arith.truncf %26 : vector<1x8x8xf32> to vector<1x8x8xbf16>
    %cst_15 = arith.constant dense<0.000000e+00> : vector<1x8x8xf32>
    %28 = tpu.matmul %25, %27, %cst_15 {dimension_numbers = #tpu.dot_dimension_numbers<[1], [1], [2], [2], [0, 0, 0, 2, 1, 2], [0], [0]>} : vector<1x8x8xbf16>, vector<1x8x8xbf16>, vector<1x8x8xf32> -> vector<1x8x8xf32>
    %cst_16 = arith.constant dense<0.000000e+00> : vector<1x8x8xf32>
    %29 = tpu.matmul %23, %28, %cst_16 {dimension_numbers = #tpu.dot_dimension_numbers<[2], [1], [1], [2], [0, 0, 0, 1, 1, 2], [0], [0]>} : vector<1x8x8xf32>, vector<1x8x8xf32>, vector<1x8x8xf32> -> vector<1x8x8xf32>
    %30 = arith.truncf %29 : vector<1x8x8xf32> to vector<1x8x8xbf16>
    %c8 = arith.constant 8 : index
    %c0_17 = arith.constant 0 : index
    %31 = vector.load %arg5[%c8, %c0_17] : memref<32x32xbf16, #tpu.memory_space<vmem>>, vector<8x32xbf16>
    %cst_18 = arith.constant dense<0.000000e+00> : vector<1x8x32xf32>
    %32 = tpu.matmul %30, %31, %cst_18 {dimension_numbers = #tpu.dot_dimension_numbers<[2], [0], [0, 1], [1], [0, 0, 0, 1, 1, 1], [], []>} : vector<1x8x8xbf16>, vector<8x32xbf16>, vector<1x8x32xf32> -> vector<1x8x32xf32>
    %33 = arith.addf %22, %32 : vector<1x8x32xf32>
    %34 = vector.extract_strided_slice %10 {offsets = [0, 0, 16], sizes = [1, 8, 8], strides = [1, 1, 1]} : vector<1x8x96xf32> to vector<1x8x8xf32>
    %35 = vector.extract_strided_slice %10 {offsets = [0, 0, 48], sizes = [1, 8, 8], strides = [1, 1, 1]} : vector<1x8x96xf32> to vector<1x8x8xf32>
    %36 = arith.truncf %35 : vector<1x8x8xf32> to vector<1x8x8xbf16>
    %37 = vector.extract_strided_slice %10 {offsets = [0, 0, 80], sizes = [1, 8, 8], strides = [1, 1, 1]} : vector<1x8x96xf32> to vector<1x8x8xf32>
    %38 = arith.truncf %37 : vector<1x8x8xf32> to vector<1x8x8xbf16>
    %cst_19 = arith.constant dense<0.000000e+00> : vector<1x8x8xf32>
    %39 = tpu.matmul %36, %38, %cst_19 {dimension_numbers = #tpu.dot_dimension_numbers<[1], [1], [2], [2], [0, 0, 0, 2, 1, 2], [0], [0]>} : vector<1x8x8xbf16>, vector<1x8x8xbf16>, vector<1x8x8xf32> -> vector<1x8x8xf32>
    %cst_20 = arith.constant dense<0.000000e+00> : vector<1x8x8xf32>
    %40 = tpu.matmul %34, %39, %cst_20 {dimension_numbers = #tpu.dot_dimension_numbers<[2], [1], [1], [2], [0, 0, 0, 1, 1, 2], [0], [0]>} : vector<1x8x8xf32>, vector<1x8x8xf32>, vector<1x8x8xf32> -> vector<1x8x8xf32>
    %41 = arith.truncf %40 : vector<1x8x8xf32> to vector<1x8x8xbf16>
    %c16 = arith.constant 16 : index
    %c0_21 = arith.constant 0 : index
    %42 = vector.load %arg5[%c16, %c0_21] : memref<32x32xbf16, #tpu.memory_space<vmem>>, vector<8x32xbf16>
    %cst_22 = arith.constant dense<0.000000e+00> : vector<1x8x32xf32>
    %43 = tpu.matmul %41, %42, %cst_22 {dimension_numbers = #tpu.dot_dimension_numbers<[2], [0], [0, 1], [1], [0, 0, 0, 1, 1, 1], [], []>} : vector<1x8x8xbf16>, vector<8x32xbf16>, vector<1x8x32xf32> -> vector<1x8x32xf32>
    %44 = arith.addf %33, %43 : vector<1x8x32xf32>
    %45 = vector.extract_strided_slice %10 {offsets = [0, 0, 24], sizes = [1, 8, 8], strides = [1, 1, 1]} : vector<1x8x96xf32> to vector<1x8x8xf32>
    %46 = vector.extract_strided_slice %10 {offsets = [0, 0, 56], sizes = [1, 8, 8], strides = [1, 1, 1]} : vector<1x8x96xf32> to vector<1x8x8xf32>
    %47 = arith.truncf %46 : vector<1x8x8xf32> to vector<1x8x8xbf16>
    %48 = vector.extract_strided_slice %10 {offsets = [0, 0, 88], sizes = [1, 8, 8], strides = [1, 1, 1]} : vector<1x8x96xf32> to vector<1x8x8xf32>
    %49 = arith.truncf %48 : vector<1x8x8xf32> to vector<1x8x8xbf16>
    %cst_23 = arith.constant dense<0.000000e+00> : vector<1x8x8xf32>
    %50 = tpu.matmul %47, %49, %cst_23 {dimension_numbers = #tpu.dot_dimension_numbers<[1], [1], [2], [2], [0, 0, 0, 2, 1, 2], [0], [0]>} : vector<1x8x8xbf16>, vector<1x8x8xbf16>, vector<1x8x8xf32> -> vector<1x8x8xf32>
    %cst_24 = arith.constant dense<0.000000e+00> : vector<1x8x8xf32>
    %51 = tpu.matmul %45, %50, %cst_24 {dimension_numbers = #tpu.dot_dimension_numbers<[2], [1], [1], [2], [0, 0, 0, 1, 1, 2], [0], [0]>} : vector<1x8x8xf32>, vector<1x8x8xf32>, vector<1x8x8xf32> -> vector<1x8x8xf32>
    %52 = arith.truncf %51 : vector<1x8x8xf32> to vector<1x8x8xbf16>
    %c24 = arith.constant 24 : index
    %c0_25 = arith.constant 0 : index
    %53 = vector.load %arg5[%c24, %c0_25] : memref<32x32xbf16, #tpu.memory_space<vmem>>, vector<8x32xbf16>
    %cst_26 = arith.constant dense<0.000000e+00> : vector<1x8x32xf32>
    %54 = tpu.matmul %52, %53, %cst_26 {dimension_numbers = #tpu.dot_dimension_numbers<[2], [0], [0, 1], [1], [0, 0, 0, 1, 1, 1], [], []>} : vector<1x8x8xbf16>, vector<8x32xbf16>, vector<1x8x32xf32> -> vector<1x8x32xf32>
    %55 = arith.addf %44, %54 : vector<1x8x32xf32>
    %c0_27 = arith.constant 0 : index
    %c0_28 = arith.constant 0 : index
    %56 = vector.load %arg6[%c0_27, %c0_28] : memref<1x32xf32, #tpu.memory_space<vmem>>, vector<1x32xf32>
    %57 = vector.shape_cast %56 : vector<1x32xf32> to vector<1x1x32xf32>
    %58 = vector.broadcast %57 : vector<1x1x32xf32> to vector<1x8x32xf32>
    %59 = arith.addf %55, %58 : vector<1x8x32xf32>
    %c0_29 = arith.constant 0 : index
    %c0_30 = arith.constant 0 : index
    %c0_31 = arith.constant 0 : index
    %60 = vector.load %arg7[%c0_29, %c0_30, %c0_31] : memref<1x8x32xf32, #tpu.memory_space<vmem>>, vector<1x8x32xf32>
    tpu.vector_store %arg7[%c0_29, %c0_30, %c0_31], %59 {strides = array<i32>} : memref<1x8x32xf32, #tpu.memory_space<vmem>>, vector<1x8x32xf32>,
    return
  }
  func.func @transform_0(%arg0: i32, %arg1: memref<16xi32, #tpu.memory_space<smem>>) -> (i32, i32) {
    %c0_i32 = arith.constant 0 : i32
    %c0_i32_0 = arith.constant 0 : i32
    %c0_i32_1 = arith.constant 0 : i32
    return %c0_i32, %c0_i32_0 : i32, i32
  }
  func.func @transform_1(%arg0: i32, %arg1: memref<16xi32, #tpu.memory_space<smem>>) -> (i32, i32) {
    %c0_i32 = arith.constant 0 : i32
    %c0_i32_0 = arith.constant 0 : i32
    %c0_i32_1 = arith.constant 0 : i32
    return %c0_i32, %c0_i32_0 : i32, i32
  }
  func.func @transform_2(%arg0: i32, %arg1: memref<16xi32, #tpu.memory_space<smem>>) -> (i32, i32) {
    %c0_i32 = arith.constant 0 : i32
    %c0_i32_0 = arith.constant 0 : i32
    %c0_i32_1 = arith.constant 0 : i32
    return %c0_i32, %c0_i32_0 : i32, i32
  }
  func.func @transform_3(%arg0: i32, %arg1: memref<16xi32, #tpu.memory_space<smem>>) -> (i32, i32) {
    %c0_i32 = arith.constant 0 : i32
    %c0_i32_0 = arith.constant 0 : i32
    %c0_i32_1 = arith.constant 0 : i32
    return %c0_i32, %c0_i32_0 : i32, i32
  }
  func.func @transform_4(%arg0: i32, %arg1: memref<16xi32, #tpu.memory_space<smem>>) -> (i32, i32) {
    %c0_i32 = arith.constant 0 : i32
    %c0_i32_0 = arith.constant 0 : i32
    %c0_i32_1 = arith.constant 0 : i32
    return %c0_i32, %c0_i32_0 : i32, i32
  }
  func.func @transform_5(%arg0: i32, %arg1: memref<16xi32, #tpu.memory_space<smem>>) -> (i32, i32, i32) {
    %c0_i32 = arith.constant 0 : i32
    %c0_i32_0 = arith.constant 0 : i32
    %c0_i32_1 = arith.constant 0 : i32
    return %arg0, %c0_i32, %c0_i32_0 : i32, i32, i32
  }
}

</mosaic_0001>

<bundles_post_ra>
// kernel: tpu_custom_call.1
= control target key start
LH: loop header
LB: loop body
LE: loop exit
PB: predicated region body
PF: predicated region fallthrough
CT: control target
= control target key end

     0   :  { %s1657_s0 = inlined_call_operand.vmem [shape: s32[16], index: 0, kind: input, shape index: {}]   ;;  %s1658_s1 = inlined_call_operand.vmem [shape: f32[50,32], index: 1, kind: input, shape index: {}]   ;;  %s1659_s2 = inlined_call_operand.vmem [shape: bf16[32,96], index: 2, kind: input, shape index: {}]   ;;  %s1660_s3 = inlined_call_operand.vmem [shape: f32[1,96], index: 3, kind: input, shape index: {}]   ;;  %s1661_s4 = inlined_call_operand.vmem [shape: bf16[32,32], index: 4, kind: input, shape index: {}]   ;;  %s1662_s5 = inlined_call_operand.vmem [shape: f32[1,32], index: 5, kind: input, shape index: {}]   ;;  %s1663_s6 = inlined_call_operand.hbm [shape: f32[2,8,32], index: 6, kind: output, shape index: {}]  }
   0x1   :  { %s11_s23 = sshll.u32 %s1657_s0, 4  ;;  %s12_s23 = int_to_ptr.vmem [resolvable:$true] %s11_s23 }
   0x2   :  { %s1325_s24 = scalar_lea.vmem %s12_s23, 16  ;;  %p1330_p1 = scmp.lt.s32.totalorder %s12_s23, %s12_s23 }
   0x3   :  { %p1326_p0 = scmp.ne.s32.totalorder %s12_s23, %s1325_s24  ;;  %p1331_p2 = scmp.lt.s32.totalorder %s1325_s24, %s1325_s24 }
   0x5   :  { %p1332_p3 = por %p1331_p2, %p1330_p1 }
   0x7   :  { %p1333_p4 = pnand %p1332_p3, %p1326_p0 }
   0x9   :  { %1336 = shalt.err (!%p1333_p4)  }
   0xa   :  { %s1409_s25 = smov [#allocation4]  }
   0xb   :  { %14 = dma.vmem_to_smem %s12_s23, 16, %s1409_s25, [#allocation3] }
   0xc   :  { %1383 = dma.done.wait [#allocation3], 16 }
   0xd   :  { %1384 = vsyncadd [#allocation3], 4294967280 }
   0xe   :  { %16 = sfence }
   0xf   :  { %17 = vsyncpa [#allocation6], 0 }
  0x10   :  { %19 = vsyncpa [#allocation6 + $0x1], 0  ;;  %s1462_s26 = smov 0   ;;  %s1464_s27 = smov 0  }
  0x11   :  { %s1466_s0 = smov 0   ;;  %s1468_s28 = smov 0  }
  0x12 LB: > { %s1483_s29 = sadd.s32 4294967295, %s1403_s28   ;;  %s1132_s30 = sadd.s32 4294967294, %s1403_s28   ;;  %s1403_s28 = sphi %s1468_s28, %s1669_s28   ;;  %s1399_s0 = sphi %s1466_s0, %s1668_s0   ;;  %s1395_s27 = sphi %s1464_s27, %s1667_s27   ;;  %s1391_s26 = sphi %s1462_s26, %s1666_s26  }
  0x13   : > { %s1487_s7 = sadd.s32 1, %s1403_s28   ;;  %s137_s8 = sadd.s32 1, %s1399_s0 }
  0x14   : > { %s134_s9 = ssub.s32 %s1403_s28, %s1487_s7  ;;  %p147_p5 = scmp.ne.s32.totalorder %s1399_s0, %s1395_s27 }
  0x15   : > { %p135_p6 = scmp.eq.s32.totalorder %s134_s9, 0  ;;  %p148_p7 = scmp.eq.s32.totalorder %s1483_s29, 1 }
  0x16   : > { %p153_p8 = scmp.ne.s32.totalorder %s1395_s27, %s1391_s26  ;;  %p154_p9 = scmp.eq.s32.totalorder %s1132_s30, 1 }
  0x17   : > { %s1498_s10 = scalar_select %p135_p6, %s1399_s0, %s137_s8  }
  0x18   : > { %p1500_p10 = por %p148_p7, %p147_p5  ;;  %p1504_p11 = por %p154_p9, %p153_p8 }
  0x19   : > { %p1134_p12 = scmp.ge.s32.totalorder %s1403_s28, 1  ;;  %p187_p13 = scmp.lt.s32.totalorder %s1403_s28, 3 }
  0x1b   : > { %p188_p0 = pnand %p1134_p12, %p187_p13 }
  0x1c   : > { %s207_s13 = sand.u32 (!%p188_p0), 1, %s1395_s27   ;;  %s1136_s14 = sshll.u32 (!%p188_p0), %s1483_s29, 3 }
  0x1d   : > { %191 = sbr.rel (%p188_p0) target bundleno = 1668 (0x684), region = 40  ;;  %s1514_s15 = sshll.u32 (!%p188_p0), %s207_s13, 3 }
  0x1e   : > { %s209_s16 = scalar_lea.vmem (!%p188_p0), [#allocation5], %s1514_s15  ;;  %s1405_s17 = smov (!%p188_p0), 0  }
  0x22 LB: >> { %s218_s18 = sadd.s32 %s1407_s17, %s1136_s14  ;;  %vm223_vm0 = vcmask 253952   ;;  %s222_s23 = scalar_lea.vmem [#allocation2], %s1407_s17  ;;  %s1407_s17 = sphi %s1405_s17, %s217_s17  }
  0x23   : >> { %s219_s19 = sld [smem:[#allocation4 + %s218_s18]]  ;;  %s217_s17 = sadd.s32 1, %s1407_s17  }
  0x24   : >> { %p214_p1 = scmp.ge.s32.totalorder %s217_s17, 8  }
  0x25   : > { %v1323_v1 = vld [vmem:[%s1659_s2 + $0x8] sm:$0xff] (%p214_p1)   ;;  %v1410_v2 = vmov (%p214_p1), 0.0   ;;  %v1324_v3 = vld [vmem:[%s1659_s2] sm:$0xff] (%p214_p1)   ;;  %vm1411_vm1 = vmmov (%p214_p1), 0   ;;  %vm250_vm2 = vcmask (%p214_p1), 261120   ;;  %s1412_s17 = smov (%p214_p1), 64  }
  0x26   : > { %1185 = vmatprep.subr.bf16.mxu0 (%p214_p1), %v1410_v2  ;;  %1193 = vmatprep.subr.bf16.mxu1 (%p214_p1), %v1410_v2  ;;  %v1137_v6 = vld [vmem:[%s1660_s3] ss:$0 sm:$0xff] (%p214_p1)  ;;  %s1413_s18 = smov (%p214_p1), 96   ;;  %s1415_s20 = smov (%p214_p1), 88   ;;  %vm321_vm3 = vcmask (%p214_p1), 1043456   ;;  %vm317_vm4 = vcmask (%p214_p1), 64512  }
  0x27   : > { %216 = sbr.rel (!%p214_p1) target bundleno = 34 (0x22), region = 81  ;;  %1186 = vmatpush3.bf16.msra.mxu0 (%p214_p1), %v1323_v1  ;;  %1189 = vmatprep.mubr.msk.bf16.mxu0 (%p214_p1), %vm1411_vm1, %v1410_v2  ;;  %s1416_s21 = smov (%p214_p1), 80   ;;  %v439_v33 = vld [vmem:[%s1661_s4] sm:$0xf] (%p214_p1)  ;;  %v582_v35 = vld [vmem:[%s1661_s4 + $0x4] sm:$0xf] (%p214_p1) }
  0x28   : > { %1187 = vmatprep.subr.bf16.mxu0 (%p214_p1), %v1410_v2  ;;  %1195 = vmatprep.mubr.msk.bf16.mxu1 (%p214_p1), %vm1411_vm1, %v1410_v2  ;;  %s1419_s24 = smov (%p214_p1), 72   ;;  %s1420_s25 = smov (%p214_p1), 112   ;;  %v633_v34 = vsel (%p214_p1), %vm321_vm3, %v439_v33, 0  ;;  %v587_v36 = vsel (%p214_p1), %vm321_vm3, %v582_v35, 0  ;;  %v817_v62 = vld [vmem:[%s1661_s4 + $0x8] sm:$0xf] (%p214_p1) }
  0x29   : >> { %s220_s22 = scalar_lea.vmem %s1658_s1, %s219_s19  ;;  %s1414_s19 = smov (%p214_p1), 56   ;;  %v822_v63 = vsel (%p214_p1), %vm321_vm3, %v817_v62, 0 }
  0x2a   : >> { %v221_v0 = vld [vmem:[%s220_s22] sm:$0x1]  ;;  %s1417_s22 = smov (%p214_p1), 120   ;;  %s1421_s30 = smov (%p214_p1), 40  }
  0x2b   : >> { %224 = vst.msk [vmem:[%s222_s23] sm:$0x1] %vm223_vm0, %v221_v0  ;;  %1188 = vmatpush3.bf16.msra.mxu0 (%p214_p1), %v1324_v3  ;;  %s1418_s23 = smov (%p214_p1), 48   ;;  %s1422_s8 = smov (%p214_p1), 104  }
  0x2c   : > { %1204 = vmatprep.subr.bf16.mxu0 %v1410_v2 }
  0x32   : > { %v225_v4 = vld [vmem:[#allocation2] sm:$0xff] }
  0x33   : > { %v226_v5 = vpack.c.bf16 %v225_v4, %v225_v4 }
  0x35   : > { %1190 = vmatmul.mubr.msk.bf16.vlgmr.msra.gmra.mxu0 %vm250_vm2, %v226_v5 }
  0x36   : > { %1206 = vmatprep.mubr.msk.bf16.mxu0 %vm1411_vm1, %v1410_v2 }
  0xf5   : > { %v288_v7 = vpop.f32.mrf.mxu0 }
  0xf6   : > { %v289_v8 = vadd.f32 %v1137_v6, %v288_v7 }
  0xf7   : > { %v1191_v9 = vpop.f32.mrf.mxu0 }
  0xf8   : > { %v294_v10 = vpack.c.bf16 %v289_v8, %v289_v8  ;;  %v1007_v9 = vld [vmem:[%s1661_s4 + $0xc] sm:$0xf] }
  0xf9   : > { %v291_v11 = vpop.f32.mrf.mxu0 }
  0xfa   : > { %315 = vrot.lane.b32.xlu1 %v294_v10, %s1412_s17  ;;  %296 = vrot.lane.b32.xlu0 %v294_v10, %s1413_s18  ;;  %s1423_s18 = smov [#allocation5]  }
  0xfb   : > { %v1192_v12 = vpop.f32.mrf.mxu0 }
  0xfe   : > { %459 = vrot.lane.b32.xlu1 %v294_v10, %s1414_s19  ;;  %440 = vrot.lane.b32.xlu0 %v294_v10, %s1415_s20  ;;  %s1341_s19 = sshll.u32 %s1423_s18, 4  ;;  %s1342_s19 = int_to_ptr.vmem [resolvable:$false] %s1341_s19 }
  0xff   : > { %s1343_s20 = scalar_lea.vmem %s1342_s19, 256 }
 0x16c   : > { %v316_v13 = vpop.permute.xlu1 %315  ;;  %v297_v14 = vpop.permute.xlu0 %296 }
 0x16d   : > { %299 = vxpose.xlu0.c.b16.start.end [1/1] (short) (narrow) %v297_v14, 16  ;;  %v323_v15 = vsel %vm321_vm3, %v316_v13, 0 }
 0x16e   : > { %1194 = vmatpush3.bf16.msra.mxu1 %v323_v15 }
 0x16f   : > { %1199 = vmatprep.subr.mxu1 %v1410_v2 }
 0x170   : > { %v460_v16 = vpop.permute.xlu1 %459  ;;  %v441_v17 = vpop.permute.xlu0 %440 }
 0x171   : > { %v465_v18 = vsel %vm321_vm3, %v460_v16, 0  ;;  %443 = vxpose.xlu1.c.b16.start.end [1/1] (short) (narrow) %v441_v17, 16 }
 0x172   : > { %1205 = vmatpush3.bf16.msra.mxu0 %v465_v18 }
 0x173   : > { %1221 = vmatprep.subr.bf16.mxu0 %v1410_v2 }
 0x175   : > { %675 = vrot.lane.b32.xlu1 %v294_v10, %s1416_s21 }
 0x176   : > { %507 = vrot.lane.b32.xlu0 %v289_v8, %s1417_s22 }
 0x17a   : > { %694 = vrot.lane.b32.xlu0 %v294_v10, %s1418_s23 }
 0x17e   : > { %865 = vrot.lane.b32.xlu0 %v294_v10, %s1419_s24 }
 0x182   : > { %742 = vrot.lane.b32.xlu0 %v289_v8, %s1420_s25  ;;  %s1155_s25 = sshll.u32 %s1483_s29, 7  ;;  %s1065_s29 = scalar_lea.sflag [#allocation6], %s207_s13 }
 0x183   : > { %s1611_s14 = scalar_lea.hbm %s1663_s6, %s1155_s25 }
 0x186   : > { %884 = vrot.lane.b32.xlu0 %v294_v10, %s1421_s30  ;;  %v1012_v10 = vsel %vm321_vm3, %v1007_v9, 0  ;;  %s1078_s30 = sshll.u32 %s209_s16, 4  ;;  %s1613_s30 = int_to_ptr.vmem [resolvable:$true] %s1078_s30 }
 0x187   : > { %s1337_s17 = scalar_lea.vmem %s1613_s30, 128  ;;  %p1344_p5 = scmp.lt.s32.totalorder %s1613_s30, %s1342_s19 }
 0x188   : > { %p1338_p2 = scmp.ne.s32.totalorder %s1613_s30, %s1337_s17  ;;  %p1345_p6 = scmp.lt.s32.totalorder %s1343_s20, %s1337_s17 }
 0x18a   : > { %p1339_p3 = pnand %p1338_p2, %p1500_p10  ;;  %p1346_p7 = por %p1345_p6, %p1344_p5 }
 0x18c   : > { %p1340_p4 = pneg %p1339_p3 }
 0x18e   : > { %p1347_p8 = pnand %p1346_p7, %p1340_p4 }
 0x1cf   : > { %v307_v19 = vpop.trf.xlu0 }
 0x1d0   : > { %1196 = vmatmul.mubr.msk.bf16.vlgmr.msra.gmra.mxu1 %vm317_vm4, %v307_v19  ;;  %v1153_v19 = vld [vmem:[%s1662_s5] ss:$0 sm:$0xff] }
 0x1d1   : > { %1201 = vmatprep.mubr.msk.f32.mxu1 %vm1411_vm1, %v1410_v2 }
 0x1d3   : > { %v451_v20 = vpop.trf.xlu1 }
 0x1d4   : > { %1207 = vmatmul.mubr.msk.bf16.vlgmr.msra.gmra.mxu0 %vm317_vm4, %v451_v20 }
 0x1d5   : > { %1223 = vmatprep.mubr.msk.bf16.mxu0 %vm1411_vm1, %v1410_v2  ;;  %1222 = vmatpush3.bf16.msra.mxu0 %v633_v34 }
 0x1d6   : > { %1233 = vmatprep.subr.mxu0 %v1410_v2 }
 0x1e7   : > { %v676_v21 = vpop.permute.xlu1 %675 }
 0x1e8   : > { %678 = vxpose.xlu1.c.b16.start.end [1/1] (short) (narrow) %v676_v21, 16  ;;  %v508_v22 = vpop.permute.xlu0 %507 }
 0x1ec   : > { %932 = vrot.lane.b32.xlu1 %v289_v8, %s1422_s8  ;;  %v695_v23 = vpop.permute.xlu0 %694 }
 0x1ed   : > { %v700_v44 = vsel %vm321_vm3, %v695_v23, 0 }
 0x1f0   : > { %v866_v24 = vpop.permute.xlu0 %865 }
 0x1f1   : > { %868 = vxpose.xlu0.c.b16.start.end [1/1] (short) (narrow) %v866_v24, 16 }
 0x1f4   : > { %v743_v42 = vpop.permute.xlu0 %742 }
 0x1f8   : > { %v885_v45 = vpop.permute.xlu0 %884 }
 0x1f9   : > { %v890_v47 = vsel %vm321_vm3, %v885_v45, 0 }
 0x24a   : > { %v686_v46 = vpop.trf.xlu1 }
 0x253   : > { %v876_v48 = vpop.trf.xlu0 }
 0x290   : > { %v359_v25 = vpop.f32.mrf.mxu1 }
 0x291   : > { %1200 = vmatpush3.msra.mxu1 %v359_v25 }
 0x292   : > { %v1197_v26 = vpop.f32.mrf.mxu1  ;;  %1202 = vmatmul.mubr.msk.f32.vlgmr.msra.gmra.mxu1 %vm317_vm4, %v289_v8  ;;  %1210 = vmatprep.subr.mxu1 %v1410_v2  ;;  %v933_v8 = vpop.permute.xlu1 %932 }
 0x293   : > { %1212 = vmatprep.mubr.msk.f32.mxu1 %vm1411_vm1, %v1410_v2 }
 0x294   : > { %v362_v27 = vpop.f32.mrf.mxu1  ;;  %v501_v28 = vpop.f32.mrf.mxu0 }
 0x295   : > { %1211 = vmatpush3.msra.mxu1 %v501_v28 }
 0x296   : > { %v1198_v29 = vpop.f32.mrf.mxu1  ;;  %v1208_v30 = vpop.f32.mrf.mxu0  ;;  %1213 = vmatmul.mubr.msk.f32.vlgmr.msra.gmra.mxu1 %vm317_vm4, %v508_v22  ;;  %1215 = vmatprep.subr.bf16.mxu1 %v1410_v2 }
 0x297   : > { %1217 = vmatprep.mubr.msk.bf16.mxu1 %vm1411_vm1, %v1410_v2  ;;  %1216 = vmatpush3.bf16.msra.mxu1 %v587_v36 }
 0x298   : > { %v504_v31 = vpop.f32.mrf.mxu0  ;;  %1227 = vmatprep.subr.bf16.mxu1 %v1410_v2 }
 0x29a   : > { %v1209_v32 = vpop.f32.mrf.mxu0 }
 0x352   : > { %v434_v37 = vpop.f32.mrf.mxu1 }
 0x353   : > { %v438_v38 = vpack.c.bf16 %v434_v37, %v434_v37 }
 0x354   : > { %v1203_v39 = vpop.f32.mrf.mxu1 }
 0x355   : > { %1224 = vmatmul.mubr.msk.bf16.vlgmr.msra.gmra.mxu0 %vm317_vm4, %v438_v38 }
 0x356   : > { %v577_v40 = vpop.f32.mrf.mxu1  ;;  %1235 = vmatprep.mubr.msk.f32.mxu0 %vm1411_vm1, %v1410_v2 }
 0x357   : > { %v581_v41 = vpack.c.bf16 %v577_v40, %v577_v40 }
 0x358   : > { %v1214_v43 = vpop.f32.mrf.mxu1 }
 0x359   : > { %1218 = vmatmul.mubr.msk.bf16.vlgmr.msra.gmra.mxu1 %vm317_vm4, %v581_v41 }
 0x35a   : > { %1228 = vmatpush3.bf16.msra.mxu1 %v700_v44  ;;  %1229 = vmatprep.mubr.msk.bf16.mxu1 %vm1411_vm1, %v1410_v2 }
 0x35b   : > { %1244 = vmatprep.subr.bf16.mxu1 %v1410_v2 }
 0x361   : > { %1230 = vmatmul.mubr.msk.bf16.vlgmr.msra.gmra.mxu1 %vm317_vm4, %v686_v46 }
 0x362   : > { %1245 = vmatpush3.bf16.msra.mxu1 %v890_v47  ;;  %1246 = vmatprep.mubr.msk.bf16.mxu1 %vm1411_vm1, %v1410_v2 }
 0x363   : > { %1255 = vmatprep.subr.bf16.mxu1 %v1410_v2 }
 0x369   : > { %1247 = vmatmul.mubr.msk.bf16.vlgmr.msra.gmra.mxu1 %vm317_vm4, %v876_v48 }
 0x36a   : > { %1257 = vmatprep.mubr.msk.bf16.mxu1 %vm1411_vm1, %v1410_v2  ;;  %1256 = vmatpush3.bf16.msra.mxu1 %v1012_v10 }
 0x415   : > { %v669_v49 = vpop.f32.mrf.mxu0 }
 0x417   : > { %v1225_v50 = vpop.f32.mrf.mxu0 }
 0x419   : > { %v623_v51 = vpop.f32.mrf.mxu1  ;;  %v672_v52 = vpop.f32.mrf.mxu0 }
 0x41a   : > { %v670_v53 = vadd.f32 %v669_v49, %v623_v51 }
 0x41b   : > { %v1219_v54 = vpop.f32.mrf.mxu1  ;;  %v1226_v55 = vpop.f32.mrf.mxu0 }
 0x41d   : > { %v626_v56 = vpop.f32.mrf.mxu1 }
 0x41f   : > { %v1220_v57 = vpop.f32.mrf.mxu1 }
 0x421   : > { %v736_v58 = vpop.f32.mrf.mxu1 }
 0x422   : > { %1234 = vmatpush3.msra.mxu0 %v736_v58 }
 0x423   : > { %v1231_v59 = vpop.f32.mrf.mxu1  ;;  %1236 = vmatmul.mubr.msk.f32.vlgmr.msra.gmra.mxu0 %vm317_vm4, %v743_v42  ;;  %1238 = vmatprep.subr.bf16.mxu0 %v1410_v2 }
 0x424   : > { %1240 = vmatprep.mubr.msk.bf16.mxu0 %vm1411_vm1, %v1410_v2  ;;  %1239 = vmatpush3.bf16.msra.mxu0 %v822_v63 }
 0x425   : > { %v739_v60 = vpop.f32.mrf.mxu1  ;;  %1250 = vmatprep.subr.mxu0 %v1410_v2 }
 0x427   : > { %v1232_v61 = vpop.f32.mrf.mxu1 }
 0x429   : > { %v926_v0 = vpop.f32.mrf.mxu1 }
 0x42b   : > { %v1248_v1 = vpop.f32.mrf.mxu1 }
 0x42d   : > { %v929_v3 = vpop.f32.mrf.mxu1 }
 0x42f   : > { %v1249_v4 = vpop.f32.mrf.mxu1 }
 0x4e3   : > { %v812_v5 = vpop.f32.mrf.mxu0 }
 0x4e4   : > { %v816_v6 = vpack.c.bf16 %v812_v5, %v812_v5 }
 0x4e5   : > { %v1237_v7 = vpop.f32.mrf.mxu0 }
 0x4e6   : > { %1241 = vmatmul.mubr.msk.bf16.vlgmr.msra.gmra.mxu0 %vm317_vm4, %v816_v6 }
 0x4e7   : > { %1251 = vmatpush3.msra.mxu0 %v926_v0  ;;  %1252 = vmatprep.mubr.msk.f32.mxu0 %vm1411_vm1, %v1410_v2 }
 0x4ee   : > { %1253 = vmatmul.mubr.msk.f32.vlgmr.msra.gmra.mxu0 %vm317_vm4, %v933_v8 }
 0x5a6   : > { %v858_v11 = vpop.f32.mrf.mxu0 }
 0x5a7   : > { %v864_v12 = vadd.f32 %v858_v11, %v670_v53 }
 0x5a8   : > { %v1242_v13 = vpop.f32.mrf.mxu0 }
 0x5aa   : > { %v861_v14 = vpop.f32.mrf.mxu0 }
 0x5ac   : > { %v1243_v15 = vpop.f32.mrf.mxu0 }
 0x5ae   : > { %v1002_v16 = vpop.f32.mrf.mxu0 }
 0x5af   : > { %v1006_v2 = vpack.c.bf16 %v1002_v16, %v1002_v16 }
 0x5b0   : > { %v1254_v17 = vpop.f32.mrf.mxu0 }
 0x5b1   : > { %1258 = vmatmul.mubr.msk.bf16.vlgmr.msra.gmra.mxu1 %vm317_vm4, %v1006_v2 }
 0x671   : > { %v1048_v18 = vpop.f32.mrf.mxu1 }
 0x672   : > { %v1054_v20 = vadd.f32 %v1048_v18, %v864_v12 }
 0x673   : > { %v1259_v21 = vpop.f32.mrf.mxu1 }
 0x674   : > { %v1062_v22 = vadd.f32 %v1153_v19, %v1054_v20 }
 0x675   : > { %v1051_v23 = vpop.f32.mrf.mxu1 }
 0x676   : > { %1063 = vst.msk [vmem:[%s209_s16] sm:$0xff] %vm250_vm2, %v1062_v22 }
 0x677   : > { %v1260_v24 = vpop.f32.mrf.mxu1 }
 0x678   : > { %1350 = shalt.err (!%p1347_p8)
}
 0x679   : > { %s1351_s15 = scalar_lea.hbm %s1611_s14, 128  ;;  %s1355_s21 = scalar_lea.hbm %s1663_s6, 256 }
 0x67a   : > { %p1352_p9 = scmp.ne.s32.totalorder %s1611_s14, %s1351_s15  ;;  %p1356_p0 = scmp.lt.s32.totalorder %s1611_s14, %s1663_s6 }
 0x67b   : > { %p1357_p1 = scmp.lt.s32.totalorder %s1355_s21, %s1351_s15 }
 0x67c   : > { %p1353_p12 = pnand %p1352_p9, %p1500_p10 }
 0x67d   : > { %p1358_p2 = por %p1357_p1, %p1356_p0 }
 0x67e   : > { %p1354_p13 = pneg %p1353_p12 }
 0x680   : > { %p1359_p3 = pnand %p1358_p2, %p1354_p13 }
 0x682   : > { %1362 = shalt.err (!%p1359_p3)
}
 0x683   : > { %1261 = dma.vmem_to_hbm [thread:$0]  (%p1500_p10), %s1613_s30, 128, %s1611_s14, %s1065_s29  }
 0x684 PF: > { %p1267_p4 = scmp.ge.s32.totalorder %s1403_s28, 2  ;;  %s1090_s24 = sand.u32 1, %s1391_s26  }
 0x685   : > { %s1091_s25 = scalar_lea.sflag [#allocation6], %s1090_s24 }
 0x686   : > { %p1264_p5 = pnand %p1267_p4, %p1504_p11 }
 0x688   : > { %p1265_p6 = pneg %p1264_p5 }
 0x68a   : > { %1386 = dma.done.wait (%p1265_p6), %s1091_s25, 128  }
 0x68b   : > { %1388 = vsyncadd (%p1265_p6), %s1091_s25, 4294967168  ;;  %p22_p7 = scmp.ge.s32.totalorder %s1487_s7, 4   ;;  %s1666_s26 = smov %s1395_s27 }
 0x68c   : > { %s1667_s27 = smov %s1399_s0  ;;  %s1668_s0 = smov %s1498_s10 }
 0x68d   : > { %s1669_s28 = smov %s1487_s7  ;;  %24 = sbr.rel (!%p22_p7) target bundleno = 18 (0x12), region = 92 }
 0x692   :  { %1096 = vsyncpa [#allocation6], 1 }
 0x693   :  { %1098 = vsyncpa [#allocation6 + $0x1], 1 }

</bundles_post_ra>
